<compile_context>
chip_gen: v7x
topology: tpu7x:2x2x1
jax: 0.10.0
libtpu: 0.0.40
codegen_flags: <defaults>
</compile_context>

<pallas_src>
import functools

import jax
import jax.numpy as jnp
from jax.experimental import pallas as pl
from jax.experimental.pallas import tpu as pltpu


def _knn_kernel(x_ref, lab_ref, out_ref, loss_ref, *, n_rows, tile_rows):
    """One tile of `tile_rows` rows: L1-normalize each row, write it back, and emit
    this tile's summed cross-entropy loss (reduced across tiles in the wrapper).

    Rows past `n_rows` (boundary-block over-reads) are masked out of the loss; their
    output writes are dropped by Pallas' boundary clipping.
    """
    i = pl.program_id(0)

    x = x_ref[...].astype(jnp.float32)                                        # (TR, C)
    lab = lab_ref[...]                                                        # (TR, 1) int32

    # ---- L1 normalize (torch.nn.functional.normalize, p=1, eps=1e-12) ----
    denom = jnp.maximum(jnp.sum(jnp.abs(x), axis=-1, keepdims=True), 1e-12)   # (TR, 1)
    inv = 1.0 / denom                                                         # per-row recip
    y = x * inv
    out_ref[...] = y.astype(out_ref.dtype)

    # ---- cross entropy, summed over this tile ----
    # |y| <= 1 after L1 normalization, so the logsumexp needs no max shift.
    lse = jnp.log(jnp.sum(jnp.exp(y), axis=-1, keepdims=True))                # (TR, 1)

    # Picked (label) logit via lane-iota one-hot select on values already in vregs.
    lane = jax.lax.broadcasted_iota(jnp.int32, x.shape, 1)                    # (TR, C)
    picked = jnp.sum(jnp.where(lane == lab, y, 0.0), axis=-1, keepdims=True)  # (TR, 1)

    # Mask rows past the end of the array (boundary block).
    row = i * tile_rows + jax.lax.broadcasted_iota(jnp.int32, (tile_rows, 1), 0)
    per_row = jnp.where(row < n_rows, lse - picked, 0.0)                      # (TR, 1)

    loss_ref[0] = jnp.sum(per_row, axis=0, keepdims=True)                     # (1, 1)


def _round_up(x, m):
    return ((x + m - 1) // m) * m


def _vmem_capacity_bytes():
    try:
        return int(pltpu.get_tpu_info().vmem_capacity_bytes)
    except Exception:
        return 64 << 20  # conservative default (v7x-class per-core VMEM)


def _choose_tile_rows(n_rows, width, itemsize, vmem_budget_bytes, multi_core):
    """Biggest row tile whose pipeline fits the VMEM budget.

    Accounts for lane padding (a (rows, C) block costs rows * roundup(C, 128) * bytes),
    double-buffered in/out blocks, ~4 block-sized f32 temporaries the compiler
    materializes for the elementwise chain, and the lane-padded (rows, 1) int32 label
    stream.  Rows are kept a multiple of 32 so the tile is layout-legal for f32 / bf16
    / int8 inputs alike.
    """
    lane_pad = _round_up(max(width, 1), 128)
    per_row = lane_pad * (2 * itemsize + 2 * itemsize + 4 * 4) + 2 * 128 * 4
    rows = max(32, (vmem_budget_bytes // per_row) // 32 * 32)
    rows = min(rows, _round_up(n_rows, 32))
    if multi_core:
        # v7x: 2 TensorCores share the "parallel" grid axis -> want >= 4 grid steps
        # whenever the problem is big enough.
        quarter = max(32, (_round_up(n_rows, 32) // 4) // 32 * 32)
        rows = min(rows, quarter)
    return int(max(32, rows))


def knn_model_forward(logits, labels, *, tile_rows=None):
    """logits: (N, C) float, labels: (N,) int. Returns (loss, normalized_logits)."""
    N, C = logits.shape
    labels = labels.astype(jnp.int32).reshape(N, 1)     # tiny; the big array is untouched
    out_dtype = logits.dtype
    itemsize = jnp.dtype(out_dtype).itemsize

    # Generation-aware VMEM sizing.
    cap = _vmem_capacity_bytes()
    if cap <= (64 << 20):        # v7x-class: 64 MiB VMEM per core, 2 TensorCores
        budget, vmem_limit, multi_core = 20 << 20, 32 << 20, True
    else:                        # v5e / v6e: 128 MiB VMEM, 1 TensorCore
        budget, vmem_limit, multi_core = 56 << 20, 96 << 20, False

    if tile_rows is None:
        tile_rows = _choose_tile_rows(N, C, itemsize, budget, multi_core)
    grid = pl.cdiv(N, tile_rows)

    kernel = functools.partial(_knn_kernel, n_rows=N, tile_rows=tile_rows)

    cost = pl.CostEstimate(
        flops=10 * N * C,
        transcendentals=N * C,
        bytes_accessed=2 * N * C * itemsize + 4 * N + 4 * grid,
    )

    out, partial = pl.pallas_call(
        kernel,
        out_shape=(
            jax.ShapeDtypeStruct((N, C), out_dtype),
            jax.ShapeDtypeStruct((grid, 1, 1), jnp.float32),
        ),
        grid_spec=pltpu.PrefetchScalarGridSpec(
            num_scalar_prefetch=0,
            grid=(grid,),
            in_specs=[
                pl.BlockSpec((tile_rows, C), lambda i: (i, 0)),
                pl.BlockSpec((tile_rows, 1), lambda i: (i, 0)),
            ],
            out_specs=[
                pl.BlockSpec((tile_rows, C), lambda i: (i, 0)),
                pl.BlockSpec((1, 1, 1), lambda i: (i, 0, 0)),
            ],
        ),
        compiler_params=pltpu.CompilerParams(
            dimension_semantics=("parallel",),
            vmem_limit_bytes=vmem_limit,
        ),
        cost_estimate=cost,
    )(logits, labels)

    loss = jnp.sum(partial) / jnp.float32(N)
    return loss, out


def _reference(logits, labels):
    x = logits.astype(jnp.float32)
    l1 = jnp.sum(jnp.abs(x), axis=-1, keepdims=True)
    y = x / jnp.maximum(l1, 1e-12)
    lse = jax.nn.logsumexp(y, axis=-1)
    picked = jnp.take_along_axis(y, labels[:, None], axis=-1)[:, 0]
    loss = jnp.mean(lse - picked)
    return loss, y


if __name__ == "__main__":
    key = jax.random.PRNGKey(0)
    k1, k2, k3, k4 = jax.random.split(key, 4)

    # Case 1: the module's usual shape class -- batch=2 * seq=8 = 16 rows, num_labels=16.
    N1, C1 = 16, 16
    logits1 = jax.random.normal(k1, (N1, C1), dtype=jnp.float32)
    labels1 = jax.random.randint(k2, (N1,), 0, C1, dtype=jnp.int32)
    loss1, norm1 = knn_model_forward(logits1, labels1)
    jax.block_until_ready((loss1, norm1))
    ref_loss1, ref_norm1 = _reference(logits1, labels1)
    assert norm1.dtype == logits1.dtype
    assert jnp.allclose(norm1, ref_norm1, atol=1e-5, rtol=1e-5)
    assert jnp.allclose(loss1, ref_loss1, atol=1e-5, rtol=1e-5)

    # Case 2: N not divisible by the row tile -> exercises the boundary-block clipping
    # and in-kernel row mask that replaced the old wrapper-side pad / slice.
    N2, C2 = 20, 160
    logits2 = jax.random.normal(k3, (N2, C2), dtype=jnp.float32)
    labels2 = jax.random.randint(k4, (N2,), 0, C2, dtype=jnp.int32)
    loss2, norm2 = knn_model_forward(logits2, labels2, tile_rows=8)
    jax.block_until_ready((loss2, norm2))
    ref_loss2, ref_norm2 = _reference(logits2, labels2)
    assert jnp.allclose(norm2, ref_norm2, atol=1e-5, rtol=1e-5)
    assert jnp.allclose(loss2, ref_loss2, atol=1e-5, rtol=1e-5)

    # Case 3: dtype preservation (bf16 in -> bf16 normalized logits out).
    loss3, norm3 = knn_model_forward(logits1.astype(jnp.bfloat16), labels1[:, 0] if labels1.ndim > 1 else labels1)
    jax.block_until_ready((loss3, norm3))
    assert norm3.dtype == jnp.bfloat16
    assert bool(jnp.isfinite(loss3))

    print("KERNEL_OK")
</pallas_src>

<mosaic_0001>
module attributes {stable_mosaic.version = 11 : i64} {
  func.func @_knn_kernel(%arg0: i32, %arg1: memref<32x16xf32, #tpu.memory_space<vmem>>, %arg2: memref<32x1xi32, #tpu.memory_space<vmem>>, %arg3: memref<32x16xf32, #tpu.memory_space<vmem>>, %arg4: memref<1x1x1xf32, #tpu.memory_space<vmem>>) attributes {dimension_semantics = [#tpu.dimension_semantics<parallel>], iteration_bounds = array<i64: 1>, scalar_prefetch = 0 : i64, scratch_operands = 0 : i64, tpu.core_type = #tpu.core_type<tc>, window_params = [{transform_indices = @transform_0, window_bounds = array<i64: 32, 16>}, {transform_indices = @transform_1, window_bounds = array<i64: 32, 1>}, {transform_indices = @transform_2, window_bounds = array<i64: 32, 16>}, {transform_indices = @transform_3, window_bounds = array<i64: 1, 1, 1>}]} {
    %c0 = arith.constant 0 : index
    %c0_0 = arith.constant 0 : index
    %0 = vector.load %arg1[%c0, %c0_0] : memref<32x16xf32, #tpu.memory_space<vmem>>, vector<32x16xf32>
    %c0_1 = arith.constant 0 : index
    %c0_2 = arith.constant 0 : index
    %1 = vector.load %arg2[%c0_1, %c0_2] : memref<32x1xi32, #tpu.memory_space<vmem>>, vector<32x1xi32>
    %2 = math.absf %0 : vector<32x16xf32>
    %cst = arith.constant dense<0.000000e+00> : vector<32xf32>
    %3 = vector.multi_reduction <add>, %2, %cst [1] : vector<32x16xf32> to vector<32xf32>
    %4 = vector.shape_cast %3 : vector<32xf32> to vector<32x1xf32>
    %cst_3 = arith.constant 9.99999996E-13 : f32
    %5 = vector.broadcast %cst_3 : f32 to vector<32x1xf32>
    %6 = arith.maximumf %4, %5 : vector<32x1xf32>
    %cst_4 = arith.constant 1.000000e+00 : f32
    %7 = vector.broadcast %cst_4 : f32 to vector<32x1xf32>
    %8 = arith.divf %7, %6 : vector<32x1xf32>
    %9 = vector.broadcast %8 : vector<32x1xf32> to vector<32x16xf32>
    %10 = arith.mulf %0, %9 : vector<32x16xf32>
    %c0_5 = arith.constant 0 : index
    %c0_6 = arith.constant 0 : index
    %11 = vector.load %arg3[%c0_5, %c0_6] : memref<32x16xf32, #tpu.memory_space<vmem>>, vector<32x16xf32>
    tpu.vector_store %arg3[%c0_5, %c0_6], %10 {strides = array<i32>} : memref<32x16xf32, #tpu.memory_space<vmem>>, vector<32x16xf32>,
    %12 = math.exp %10 : vector<32x16xf32>
    %cst_7 = arith.constant dense<0.000000e+00> : vector<32xf32>
    %13 = vector.multi_reduction <add>, %12, %cst_7 [1] : vector<32x16xf32> to vector<32xf32>
    %14 = vector.shape_cast %13 : vector<32xf32> to vector<32x1xf32>
    %15 = math.log %14 : vector<32x1xf32>
    %16 = tpu.iota {dimensions = array<i32: 1>} : vector<32x16xi32>
    %17 = vector.broadcast %1 : vector<32x1xi32> to vector<32x16xi32>
    %18 = arith.cmpi eq, %16, %17 : vector<32x16xi32>
    %cst_8 = arith.constant 0.000000e+00 : f32
    %19 = vector.broadcast %cst_8 : f32 to vector<32x16xf32>
    %20 = arith.select %18, %10, %19 : vector<32x16xi1>, vector<32x16xf32>
    %cst_9 = arith.constant dense<0.000000e+00> : vector<32xf32>
    %21 = vector.multi_reduction <add>, %20, %cst_9 [1] : vector<32x16xf32> to vector<32xf32>
    %22 = vector.shape_cast %21 : vector<32xf32> to vector<32x1xf32>
    %c32_i32 = arith.constant 32 : i32
    %23 = arith.muli %arg0, %c32_i32 : i32
    %24 = tpu.iota {dimensions = array<i32: 0>} : vector<32x1xi32>
    %25 = vector.broadcast %23 : i32 to vector<32x1xi32>
    %26 = arith.addi %25, %24 : vector<32x1xi32>
    %c16_i32 = arith.constant 16 : i32
    %27 = vector.broadcast %c16_i32 : i32 to vector<32x1xi32>
    %28 = arith.cmpi slt, %26, %27 : vector<32x1xi32>
    %29 = arith.subf %15, %22 : vector<32x1xf32>
    %cst_10 = arith.constant 0.000000e+00 : f32
    %30 = vector.broadcast %cst_10 : f32 to vector<32x1xf32>
    %31 = arith.select %28, %29, %30 : vector<32x1xi1>, vector<32x1xf32>
    %cst_11 = arith.constant dense<0.000000e+00> : vector<1xf32>
    %32 = vector.multi_reduction <add>, %31, %cst_11 [0] : vector<32x1xf32> to vector<1xf32>
    %33 = vector.shape_cast %32 : vector<1xf32> to vector<1x1xf32>
    %c0_12 = arith.constant 0 : index
    %c0_13 = arith.constant 0 : index
    %c0_14 = arith.constant 0 : index
    %34 = vector.load %arg4[%c0_12, %c0_13, %c0_14] : memref<1x1x1xf32, #tpu.memory_space<vmem>>, vector<1x1x1xf32>
    %35 = vector.shape_cast %34 : vector<1x1x1xf32> to vector<1x1xf32>
    %36 = vector.shape_cast %33 : vector<1x1xf32> to vector<1x1x1xf32>
    tpu.vector_store %arg4[%c0_12, %c0_13, %c0_14], %36 {strides = array<i32>} : memref<1x1x1xf32, #tpu.memory_space<vmem>>, vector<1x1x1xf32>,
    return
  }
  func.func @transform_0(%arg0: i32) -> (i32, i32) {
    %c0_i32 = arith.constant 0 : i32
    %c0_i32_0 = arith.constant 0 : i32
    return %arg0, %c0_i32 : i32, i32
  }
  func.func @transform_1(%arg0: i32) -> (i32, i32) {
    %c0_i32 = arith.constant 0 : i32
    %c0_i32_0 = arith.constant 0 : i32
    return %arg0, %c0_i32 : i32, i32
  }
  func.func @transform_2(%arg0: i32) -> (i32, i32) {
    %c0_i32 = arith.constant 0 : i32
    %c0_i32_0 = arith.constant 0 : i32
    return %arg0, %c0_i32 : i32, i32
  }
  func.func @transform_3(%arg0: i32) -> (i32, i32, i32) {
    %c0_i32 = arith.constant 0 : i32
    %c0_i32_0 = arith.constant 0 : i32
    %c0_i32_1 = arith.constant 0 : i32
    return %arg0, %c0_i32, %c0_i32_0 : i32, i32, i32
  }
}

</mosaic_0001>

<bundles_post_ra>
// kernel: tpu_custom_call.1
= control target key start
LH: loop header
LB: loop body
LE: loop exit
PB: predicated region body
PF: predicated region fallthrough
CT: control target
= control target key end

     0   :  { %9 = vsyncpa [#allocation3], 0  ;;  %vm27_vm0 = vcmask 130048   ;;  %v257_v5 = vmov 0   ;;  %s336_s0 = inlined_call_operand.vmem [shape: f32[16,16], index: 0, kind: input, shape index: {}]   ;;  %s337_s1 = inlined_call_operand.vmem [shape: s32[16,1], index: 1, kind: input, shape index: {}]   ;;  %s338_s2 = inlined_call_operand.hbm [shape: f32[16,16], index: 2, kind: output, shape index: {0}]   ;;  %s339_s3 = inlined_call_operand.hbm [shape: f32[1,1,1], index: 3, kind: output, shape index: {1}]  }
   0x1   :  { %v15_v0 = vld [vmem:[%s336_s0] sm:$0xff]  ;;  %v16_v1 = vld [vmem:[%s336_s0 + $0x8] sm:$0xff]  ;;  %191 = vset.pattern.permute.xlu1 %v257_v5  ;;  %192 = vset.pattern.permute.xlu0 %v257_v5 }
   0x2   :  { %v19_v2 = vld [vmem:[%s337_s1] sm:$0xff]  ;;  %v23_v3 = vand.u32 2147483647, %v15_v0  ;;  %v24_v4 = vand.u32 2147483647, %v16_v1 }
   0x3   :  { %91 = vperm.xlu1 %191, %v19_v2  }
   0x4   :  { %10 = vsyncpa [#allocation5], 0  ;;  %v28_v6 = vsel %vm27_vm0, %v23_v3, 0.0  ;;  %v20_v7 = vld [vmem:[%s337_s1 + $0x8] sm:$0xff]  ;;  %v31_v8 = vsel %vm27_vm0, %v24_v4, 0.0  ;;  %v88_v18 = vlaneseq  ;;  %v17_v27 = vld [vmem:[%s336_s0 + $0x10] sm:$0xff] }
   0x5   :  { %29 = vadd.xlane.f32.xlu0 %v28_v6  ;;  %v25_v31 = vand.u32 2147483647, %v17_v27  ;;  %v18_v32 = vld [vmem:[%s336_s0 + $0x18] sm:$0xff]  ;;  %vm154_vm3 = vcmask 0  }
   0x6   :  { %v89_v21 = vand.u32 127, %v88_v18  ;;  %v26_v35 = vand.u32 2147483647, %v18_v32 }
   0x7   :  { %94 = vperm.xlu1 %191, %v20_v7   ;;  %v34_v34 = vsel %vm27_vm0, %v25_v31, 0.0 }
   0x8   :  { %v37_v36 = vsel %vm27_vm0, %v26_v35, 0.0 }
   0x9   :  { %32 = vadd.xlane.f32.xlu0 %v31_v8 }
  0x82   :  { %v92_v20 = vpop.permute.xlu1 %91 }
  0x83   :  { %vm102_vm1 = vcmp.eq.s32.totalorder %v89_v21, %v92_v20 }
  0x86   :  { %v95_v23 = vpop.permute.xlu1 %94 }
  0x87   :  { %vm103_vm2 = vcmp.eq.s32.totalorder %v89_v21, %v95_v23 }
  0x92   :  { %v30_v9 = vpop.xlane.xlu0 %29 }
  0x93   :  { %v40_v10 = vmax.f32 %v30_v9, 1e-12 }
  0x95   :  { %193 = vrcp.f32 %v40_v10 }
  0x96   :  { %v33_v11 = vpop.xlane.xlu0 %32 }
  0x97   :  { %v41_v12 = vmax.f32 %v33_v11, 1e-12 }
  0x99   :  { %195 = vrcp.f32 %v41_v12 }
  0x9f   :  { %v194_v13 = vpop.eup %193 }
  0xa0   :  { %v52_v14 = vmul.f32 %v194_v13, %v15_v0 }
  0xa2   :  { %56 = vst.msk [vmem:[#allocation2] sm:$0xff] %vm27_vm0, %v52_v14  ;;  %v60_v15 = vmul.f32 1.442695, %v52_v14  ;;  %v106_v25 = vsel %vm102_vm1, %v52_v14, 0.0 }
  0xa3   :  { %v196_v16 = vpop.eup %195  ;;  %v110_v28 = vsel %vm27_vm0, %v106_v25, 0.0 }
  0xa4   :  { %v53_v17 = vmul.f32 %v196_v16, %v16_v1  ;;  %197 = vpow2.f32 %v60_v15 }
  0xa6   :  { %57 = vst.msk [vmem:[#allocation2 + $0x8] sm:$0xff] %vm27_vm0, %v53_v17  ;;  %v62_v19 = vmul.f32 1.442695, %v53_v17  ;;  %v107_v30 = vsel %vm103_vm2, %v53_v17, 0.0 }
  0xa7   :  { %v113_v33 = vsel %vm27_vm0, %v107_v30, 0.0 }
  0xa8   :  { %199 = vpow2.f32 %v62_v19 }
  0xae   :  { %v198_v22 = vpop.eup %197 }
  0xaf   :  { %v68_v24 = vsel %vm27_vm0, %v198_v22, 0.0 }
  0xb0   :  { %69 = vadd.xlane.f32.xlu0 %v68_v24 }
  0xb2   :  { %v200_v26 = vpop.eup %199 }
  0xb3   :  { %v71_v29 = vsel %vm27_vm0, %v200_v26, 0.0 }
  0xb4   :  { %111 = vadd.xlane.f32.xlu0 %v110_v28  ;;  %72 = vadd.xlane.f32.xlu1 %v71_v29 }
  0xb8   :  { %114 = vadd.xlane.f32.xlu0 %v113_v33 }
  0xbc   :  { %35 = vadd.xlane.f32.xlu0 %v34_v34 }
  0xc0   :  { %38 = vadd.xlane.f32.xlu0 %v37_v36 }
 0x13d   :  { %v70_v37 = vpop.xlane.xlu0 %69 }
 0x13e   :  { %201 = vlog2.f32 %v70_v37 }
 0x141   :  { %v73_v38 = vpop.xlane.xlu1 %72  ;;  %v112_v39 = vpop.xlane.xlu0 %111 }
 0x142   :  { %203 = vlog2.f32 %v73_v38 }
 0x145   :  { %v115_v40 = vpop.xlane.xlu0 %114 }
 0x148   :  { %v202_v41 = vpop.eup %201 }
 0x149   :  { %v36_v42 = vpop.xlane.xlu0 %35  ;;  %v81_v44 = vmul.f32 0.6931472, %v202_v41 }
 0x14a   :  { %v42_v43 = vmax.f32 %v36_v42, 1e-12 }
 0x14b   :  { %v137_v49 = vsub.f32 %v81_v44, %v112_v39 }
 0x14c   :  { %v204_v45 = vpop.eup %203  ;;  %205 = vrcp.f32 %v42_v43 }
 0x14d   :  { %v83_v46 = vmul.f32 0.6931472, %v204_v45  ;;  %v39_v47 = vpop.xlane.xlu0 %38 }
 0x14e   :  { %v43_v48 = vmax.f32 %v39_v47, 1e-12 }
 0x14f   :  { %v138_v50 = vsub.f32 %v83_v46, %v115_v40 }
 0x150   :  { %207 = vrcp.f32 %v43_v48 }
 0x151   :  { %v145_v51 = vadd.f32 %v138_v50, %v137_v49 }
 0x153   :  { %v148_v52 = vrot.slane %v145_v51, 4 }
 0x155   :  { %v149_v53 = vadd.f32 %v148_v52, %v145_v51 }
 0x156   :  { %v206_v54 = vpop.eup %205 }
 0x157   :  { %v150_v55 = vrot.slane %v149_v53, 2  ;;  %v54_v56 = vmul.f32 %v206_v54, %v17_v27 }
 0x159   :  { %v151_v57 = vadd.f32 %v150_v55, %v149_v53  ;;  %58 = vst.msk [vmem:[#allocation2 + $0x10] sm:$0xff] %vm27_vm0, %v54_v56 }
 0x15a   :  { %v208_v58 = vpop.eup %207 }
 0x15b   :  { %v152_v59 = vrot.slane %v151_v57, 1  ;;  %v55_v60 = vmul.f32 %v208_v58, %v18_v32 }
 0x15d   :  { %v153_v61 = vadd.f32 %v152_v59, %v151_v57  ;;  %59 = vst.msk [vmem:[#allocation2 + $0x18] sm:$0xff] %vm27_vm0, %v55_v60 }
 0x15f   :  { %155 = vst.msk [vmem:[#allocation4] sm:$0x1] %vm154_vm3, %v153_v61 }
 0x160   :  { %160 = vsyncadd [#allocation3], 256  ;;  %s258_s0 = smov [#allocation2]  }
 0x161   :  { %s161_s23 = sshll.u32 %s258_s0, 4  ;;  %s162_s23 = int_to_ptr.vmem [resolvable:$true] %s161_s23 }
 0x162   :  { %s209_s24 = scalar_lea.vmem %s162_s23, 256  ;;  %s213_s25 = scalar_lea.vmem %s162_s23, 512 }
 0x163   :  { %p210_p0 = scmp.ne.s32.totalorder %s162_s23, %s209_s24  ;;  %p214_p1 = scmp.lt.s32.totalorder %s162_s23, %s162_s23 }
 0x164   :  { %p215_p2 = scmp.lt.s32.totalorder %s213_s25, %s209_s24 }
 0x166   :  { %p216_p3 = por %p215_p2, %p214_p1 }
 0x168   :  { %p217_p4 = pnand %p216_p3, %p210_p0 }
 0x16a   :  { %220 = shalt.err (!%p217_p4)
}
 0x16b   :  { %s221_s28 = scalar_lea.hbm %s338_s2, 256 }
 0x16c   :  { %p222_p5 = scmp.ne.s32.totalorder %s338_s2, %s221_s28  ;;  %p225_p6 = scmp.lt.u32.totalorder %s221_s28, %s338_s2 }
 0x16e   :  { %p227_p7 = pnand %p225_p6, %p222_p5 }
 0x170   :  { %230 = shalt.err (!%p227_p7)
}
 0x171   :  { %s259_s6 = smov 128   ;;  %s260_s7 = smov 8  }
 0x172   :  { %167 = dma.vmem_to_hbm [thread:$0]  %s162_s23, 256, %s338_s2, [#allocation3], %s259_s6, %s259_s6, %s260_s7  }
 0x173   :  { %s261_s10 = smov [#allocation4]  }
 0x174   :  { %s174_s11 = sshll.u32 %s261_s10, 4  ;;  %s175_s11 = int_to_ptr.vmem [resolvable:$true] %s174_s11 }
 0x175   :  { %s231_s12 = scalar_lea.vmem %s175_s11, 16  ;;  %s235_s13 = scalar_lea.vmem %s175_s11, 32 }
 0x176   :  { %p232_p8 = scmp.ne.s32.totalorder %s175_s11, %s231_s12  ;;  %p236_p9 = scmp.lt.s32.totalorder %s175_s11, %s175_s11 }
 0x177   :  { %p237_p10 = scmp.lt.s32.totalorder %s235_s13, %s231_s12 }
 0x179   :  { %p238_p11 = por %p237_p10, %p236_p9 }
 0x17b   :  { %p239_p12 = pnand %p238_p11, %p232_p8 }
 0x17d   :  { %242 = shalt.err (!%p239_p12)
}
 0x17e   :  { %s243_s16 = scalar_lea.hbm %s339_s3, 16 }
 0x17f   :  { %p244_p13 = scmp.ne.s32.totalorder %s339_s3, %s243_s16  ;;  %p247_p0 = scmp.lt.u32.totalorder %s243_s16, %s339_s3 }
 0x181   :  { %p249_p1 = pnand %p247_p0, %p244_p13 }
 0x183   :  { %252 = shalt.err (!%p249_p1)
}
 0x184   :  { %177 = dma.vmem_to_hbm [thread:$0]  %s175_s11, 16, %s339_s3, [#allocation5]  }
 0x185   :  { %253 = dma.done.wait [#allocation3], 512  }
 0x186   :  { %254 = vsyncadd [#allocation3], 4294966784 }
 0x187   :  { %255 = dma.done.wait [#allocation5], 16  }
 0x188   :  { %256 = vsyncadd [#allocation5], 4294967280 }
 0x189   :  { %184 = vsyncpa [#allocation3], 1 }
 0x18a   :  { %185 = vsyncpa [#allocation5], 1 }

</bundles_post_ra>
